<compile_context>
chip_gen: v5e
topology: v5e:2x2
jax: 0.10.0
libtpu: 0.0.40
codegen_flags: <defaults>
</compile_context>

<pallas_src>
import functools
import math

import jax
import jax.numpy as jnp
from jax.experimental import pallas as pl
from jax.experimental.pallas import tpu as pltpu

_HIDDEN = (64, 32, 16, 8)   # layer1..layer4 output widths (layer5 -> n_actions)
_PAD = 128                  # hidden layers padded to 128 lanes (MXU/lane width)
_N_LAYERS = 5


def _round_up(x, m):
    return (x + m - 1) // m * m


def _cdiv(a, b):
    return (a + b - 1) // b


def _batch_tiling(B, tile_b):
    """Pick (tile_rows, padded_batch) for the batch grid.

    - Small batches: a single tile of exactly B rows (no padding at all;
      block dim == full array dim is legal).
    - Large batches: split the 8-row-padded batch evenly across the minimum
      number of steps (>= 2 so both v7x TensorCores get work), so the last
      tile is never mostly padding.
    """
    if B <= 0:
        raise ValueError("batch must be positive")
    if B < 512 and B <= tile_b:
        return B, B
    b8 = _round_up(B, 8)
    n_steps = max(2, _cdiv(b8, tile_b))
    tb = _round_up(_cdiv(b8, n_steps), 8)
    n_steps = _cdiv(b8, tb)
    return tb, tb * n_steps


def _dqn_kernel(x_ref, w1_ref, w_ref, b_ref, o_ref):
    """Fused 5-layer MLP forward on one (tb, n_obs) activation tile.

    x_ref : (tb, n_obs)        unpadded observations
    w1_ref: (n_obs, 128)       layer1 weights (in, out), zero-padded lanes
    w_ref : (4, 128, 128)      layers 2..5 weights, zero-padded
    b_ref : (5, 1, 128)        all biases, zero-padded
    o_ref : (tb, n_actions)    narrow output (only real action lanes)

    Zero-padded lanes have zero weights AND zero biases, so they remain
    exactly 0 through every ReLU -> no masking required anywhere.
    """
    n_actions = o_ref.shape[-1]
    # Layer 1: (tb, n_obs) @ (n_obs, 128); feature padding never touches HBM.
    h = jnp.dot(x_ref[...], w1_ref[...], preferred_element_type=jnp.float32) + b_ref[0]
    h = jnp.maximum(h, 0.0)
    # Layers 2..4 with ReLU: full-width (tb,128)x(128,128) MXU dots.
    for l in range(_N_LAYERS - 2):
        h = jnp.dot(h, w_ref[l], preferred_element_type=jnp.float32) + b_ref[l + 1]
        h = jnp.maximum(h, 0.0)
    # Layer 5 (no ReLU).
    h = jnp.dot(h, w_ref[_N_LAYERS - 2],
                preferred_element_type=jnp.float32) + b_ref[_N_LAYERS - 1]
    # Narrow writeback: only the real action lanes go back to HBM.
    o_ref[...] = h[:, :n_actions].astype(o_ref.dtype)


@functools.partial(jax.jit, static_argnames=("n_actions", "tile_b"))
def dqn_forward(x, w1_slab, w_slab, b_slab, *, n_actions, tile_b=2048):
    """x: (B, n_observations) f32 -> (B, n_actions) f32 Q-values."""
    B, n_obs = x.shape
    # TODO(synk): n_observations > 128 would need K-tiling of the first layer.
    assert n_obs <= _PAD and n_actions <= _PAD

    tb, pB = _batch_tiling(B, tile_b)
    x = x.astype(jnp.float32)
    if pB != B:
        # Pad batch rows only (features stay unpadded); at most tb-1 rows.
        x = jnp.pad(x, ((0, pB - B), (0, 0)))
    n_steps = pB // tb

    # Actual traffic / math the kernel performs (padded layer widths).
    param_elems = n_obs * _PAD + (_N_LAYERS - 1) * _PAD * _PAD + _N_LAYERS * _PAD
    flops = 2 * pB * (n_obs * _PAD + (_N_LAYERS - 1) * _PAD * _PAD)
    bytes_accessed = 4 * (pB * n_obs + pB * n_actions + param_elems)

    out = pl.pallas_call(
        _dqn_kernel,
        out_shape=jax.ShapeDtypeStruct((pB, n_actions), jnp.float32),
        grid_spec=pltpu.PrefetchScalarGridSpec(
            num_scalar_prefetch=0,
            grid=(n_steps,),
            in_specs=[
                pl.BlockSpec((tb, n_obs), lambda i: (i, 0)),                       # x tile (unpadded feats)
                pl.BlockSpec((n_obs, _PAD), lambda i: (0, 0)),                     # layer1 W (resident)
                pl.BlockSpec((_N_LAYERS - 1, _PAD, _PAD), lambda i: (0, 0, 0)),    # layers 2..5 W (resident)
                pl.BlockSpec((_N_LAYERS, 1, _PAD), lambda i: (0, 0, 0)),           # biases (resident)
            ],
            out_specs=pl.BlockSpec((tb, n_actions), lambda i: (i, 0)),             # narrow output
        ),
        compiler_params=pltpu.CompilerParams(
            dimension_semantics=("parallel",),
        ),
        cost_estimate=pl.CostEstimate(
            flops=int(flops), transcendentals=0, bytes_accessed=int(bytes_accessed)),
    )(x, w1_slab, w_slab, b_slab)

    return out[:B] if pB != B else out


def init_params(key, n_observations, n_actions):
    """Deterministic init mirroring nn.Linear's U(-1/sqrt(fan_in), +1/sqrt(fan_in)).

    Weights are stored as (in_features, out_features) (transposed vs PyTorch).
    """
    dims = (n_observations,) + _HIDDEN + (n_actions,)
    params = []
    for i in range(len(dims) - 1):
        fan_in, fan_out = dims[i], dims[i + 1]
        key, kw, kb = jax.random.split(key, 3)
        bound = 1.0 / math.sqrt(fan_in)
        w = jax.random.uniform(kw, (fan_in, fan_out), jnp.float32, -bound, bound)
        b = jax.random.uniform(kb, (fan_out,), jnp.float32, -bound, bound)
        params.append((w, b))
    return params


def pack_params(params):
    """[(W (in,out), b (out,))] -> (n_obs,128), (4,128,128), (5,1,128) zero-padded slabs."""
    w1, b1 = params[0]
    n_obs, fo1 = w1.shape
    w1_slab = jnp.zeros((n_obs, _PAD), jnp.float32).at[:, :fo1].set(w1.astype(jnp.float32))
    w_slab = jnp.zeros((_N_LAYERS - 1, _PAD, _PAD), jnp.float32)
    b_slab = jnp.zeros((_N_LAYERS, 1, _PAD), jnp.float32)
    b_slab = b_slab.at[0, 0, :fo1].set(b1.reshape(-1).astype(jnp.float32))
    for l in range(1, _N_LAYERS):
        w, b = params[l]
        fi, fo = w.shape
        w_slab = w_slab.at[l - 1, :fi, :fo].set(w.astype(jnp.float32))
        b_slab = b_slab.at[l, 0, :fo].set(b.reshape(-1).astype(jnp.float32))
    return w1_slab, w_slab, b_slab


def reference_forward(x, params):
    """Pure-JAX reference (full-f32 dots so it matches the kernel's f32 MXU math)."""
    h = x
    for i, (w, b) in enumerate(params):
        h = jnp.dot(h, w, precision=jax.lax.Precision.HIGHEST) + b
        if i < len(params) - 1:
            h = jnp.maximum(h, 0.0)
    return h


if __name__ == "__main__":
    key = jax.random.PRNGKey(0)
    n_observations, n_actions = 16, 4

    kx, kp, kx2 = jax.random.split(key, 3)
    params = init_params(kp, n_observations, n_actions)
    slabs = pack_params(params)

    # Small batch: single tile, no padding anywhere.
    batch = 2
    x = jax.random.normal(kx, (batch, n_observations), jnp.float32)
    out = dqn_forward(x, *slabs, n_actions=n_actions)
    jax.block_until_ready(out)
    ref = reference_forward(x, params)
    assert out.shape == (batch, n_actions)
    assert jnp.allclose(out, ref, atol=1e-4, rtol=1e-4), float(jnp.max(jnp.abs(out - ref)))

    # Larger batch: exercises the multi-step grid (>=2 tiles -> both v7x TCs).
    batch2 = 520
    x2 = jax.random.normal(kx2, (batch2, n_observations), jnp.float32)
    out2 = dqn_forward(x2, *slabs, n_actions=n_actions)
    jax.block_until_ready(out2)
    ref2 = reference_forward(x2, params)
    assert out2.shape == (batch2, n_actions)
    assert jnp.allclose(out2, ref2, atol=1e-4, rtol=1e-4), float(jnp.max(jnp.abs(out2 - ref2)))

    print("KERNEL_OK")
</pallas_src>

<mosaic_0001>
module attributes {stable_mosaic.version = 11 : i64} {
  func.func @_dqn_kernel(%arg0: i32, %arg1: memref<2x16xf32, #tpu.memory_space<vmem>>, %arg2: memref<16x128xf32, #tpu.memory_space<vmem>>, %arg3: memref<4x128x128xf32, #tpu.memory_space<vmem>>, %arg4: memref<5x1x128xf32, #tpu.memory_space<vmem>>, %arg5: memref<2x4xf32, #tpu.memory_space<vmem>>) attributes {dimension_semantics = [#tpu.dimension_semantics<parallel>], iteration_bounds = array<i64: 1>, scalar_prefetch = 0 : i64, scratch_operands = 0 : i64, tpu.core_type = #tpu.core_type<tc>, window_params = [{transform_indices = @transform_0, window_bounds = array<i64: 2, 16>}, {pipeline_mode = #tpu.pipeline_mode<synchronous>, transform_indices = @transform_1, window_bounds = array<i64: 16, 128>}, {pipeline_mode = #tpu.pipeline_mode<synchronous>, transform_indices = @transform_2, window_bounds = array<i64: 4, 128, 128>}, {pipeline_mode = #tpu.pipeline_mode<synchronous>, transform_indices = @transform_3, window_bounds = array<i64: 5, 1, 128>}, {transform_indices = @transform_4, window_bounds = array<i64: 2, 4>}]} {
    %c0 = arith.constant 0 : index
    %c0_0 = arith.constant 0 : index
    %0 = vector.load %arg1[%c0, %c0_0] : memref<2x16xf32, #tpu.memory_space<vmem>>, vector<2x16xf32>
    %c0_1 = arith.constant 0 : index
    %c0_2 = arith.constant 0 : index
    %1 = vector.load %arg2[%c0_1, %c0_2] : memref<16x128xf32, #tpu.memory_space<vmem>>, vector<16x128xf32>
    %cst = arith.constant dense<0.000000e+00> : vector<2x128xf32>
    %2 = tpu.matmul %0, %1, %cst {dimension_numbers = #tpu.dot_dimension_numbers<[1], [0], [0], [1], [0, 0, 1, 1], [], []>} : vector<2x16xf32>, vector<16x128xf32>, vector<2x128xf32> -> vector<2x128xf32>
    %c0_3 = arith.constant 0 : index
    %c0_4 = arith.constant 0 : index
    %c0_5 = arith.constant 0 : index
    %3 = vector.load %arg4[%c0_3, %c0_4, %c0_5] : memref<5x1x128xf32, #tpu.memory_space<vmem>>, vector<1x1x128xf32>
    %4 = vector.shape_cast %3 : vector<1x1x128xf32> to vector<1x128xf32>
    %5 = vector.broadcast %4 : vector<1x128xf32> to vector<2x128xf32>
    %6 = arith.addf %2, %5 : vector<2x128xf32>
    %cst_6 = arith.constant 0.000000e+00 : f32
    %7 = vector.broadcast %cst_6 : f32 to vector<2x128xf32>
    %8 = arith.maximumf %6, %7 : vector<2x128xf32>
    %c0_7 = arith.constant 0 : index
    %c0_8 = arith.constant 0 : index
    %c0_9 = arith.constant 0 : index
    %9 = vector.load %arg3[%c0_7, %c0_8, %c0_9] : memref<4x128x128xf32, #tpu.memory_space<vmem>>, vector<1x128x128xf32>
    %10 = vector.shape_cast %9 : vector<1x128x128xf32> to vector<128x128xf32>
    %cst_10 = arith.constant dense<0.000000e+00> : vector<2x128xf32>
    %11 = tpu.matmul %8, %10, %cst_10 {dimension_numbers = #tpu.dot_dimension_numbers<[1], [0], [0], [1], [0, 0, 1, 1], [], []>} : vector<2x128xf32>, vector<128x128xf32>, vector<2x128xf32> -> vector<2x128xf32>
    %c1 = arith.constant 1 : index
    %c0_11 = arith.constant 0 : index
    %c0_12 = arith.constant 0 : index
    %12 = vector.load %arg4[%c1, %c0_11, %c0_12] : memref<5x1x128xf32, #tpu.memory_space<vmem>>, vector<1x1x128xf32>
    %13 = vector.shape_cast %12 : vector<1x1x128xf32> to vector<1x128xf32>
    %14 = vector.broadcast %13 : vector<1x128xf32> to vector<2x128xf32>
    %15 = arith.addf %11, %14 : vector<2x128xf32>
    %cst_13 = arith.constant 0.000000e+00 : f32
    %16 = vector.broadcast %cst_13 : f32 to vector<2x128xf32>
    %17 = arith.maximumf %15, %16 : vector<2x128xf32>
    %c1_14 = arith.constant 1 : index
    %c0_15 = arith.constant 0 : index
    %c0_16 = arith.constant 0 : index
    %18 = vector.load %arg3[%c1_14, %c0_15, %c0_16] : memref<4x128x128xf32, #tpu.memory_space<vmem>>, vector<1x128x128xf32>
    %19 = vector.shape_cast %18 : vector<1x128x128xf32> to vector<128x128xf32>
    %cst_17 = arith.constant dense<0.000000e+00> : vector<2x128xf32>
    %20 = tpu.matmul %17, %19, %cst_17 {dimension_numbers = #tpu.dot_dimension_numbers<[1], [0], [0], [1], [0, 0, 1, 1], [], []>} : vector<2x128xf32>, vector<128x128xf32>, vector<2x128xf32> -> vector<2x128xf32>
    %c2 = arith.constant 2 : index
    %c0_18 = arith.constant 0 : index
    %c0_19 = arith.constant 0 : index
    %21 = vector.load %arg4[%c2, %c0_18, %c0_19] : memref<5x1x128xf32, #tpu.memory_space<vmem>>, vector<1x1x128xf32>
    %22 = vector.shape_cast %21 : vector<1x1x128xf32> to vector<1x128xf32>
    %23 = vector.broadcast %22 : vector<1x128xf32> to vector<2x128xf32>
    %24 = arith.addf %20, %23 : vector<2x128xf32>
    %cst_20 = arith.constant 0.000000e+00 : f32
    %25 = vector.broadcast %cst_20 : f32 to vector<2x128xf32>
    %26 = arith.maximumf %24, %25 : vector<2x128xf32>
    %c2_21 = arith.constant 2 : index
    %c0_22 = arith.constant 0 : index
    %c0_23 = arith.constant 0 : index
    %27 = vector.load %arg3[%c2_21, %c0_22, %c0_23] : memref<4x128x128xf32, #tpu.memory_space<vmem>>, vector<1x128x128xf32>
    %28 = vector.shape_cast %27 : vector<1x128x128xf32> to vector<128x128xf32>
    %cst_24 = arith.constant dense<0.000000e+00> : vector<2x128xf32>
    %29 = tpu.matmul %26, %28, %cst_24 {dimension_numbers = #tpu.dot_dimension_numbers<[1], [0], [0], [1], [0, 0, 1, 1], [], []>} : vector<2x128xf32>, vector<128x128xf32>, vector<2x128xf32> -> vector<2x128xf32>
    %c3 = arith.constant 3 : index
    %c0_25 = arith.constant 0 : index
    %c0_26 = arith.constant 0 : index
    %30 = vector.load %arg4[%c3, %c0_25, %c0_26] : memref<5x1x128xf32, #tpu.memory_space<vmem>>, vector<1x1x128xf32>
    %31 = vector.shape_cast %30 : vector<1x1x128xf32> to vector<1x128xf32>
    %32 = vector.broadcast %31 : vector<1x128xf32> to vector<2x128xf32>
    %33 = arith.addf %29, %32 : vector<2x128xf32>
    %cst_27 = arith.constant 0.000000e+00 : f32
    %34 = vector.broadcast %cst_27 : f32 to vector<2x128xf32>
    %35 = arith.maximumf %33, %34 : vector<2x128xf32>
    %c3_28 = arith.constant 3 : index
    %c0_29 = arith.constant 0 : index
    %c0_30 = arith.constant 0 : index
    %36 = vector.load %arg3[%c3_28, %c0_29, %c0_30] : memref<4x128x128xf32, #tpu.memory_space<vmem>>, vector<1x128x128xf32>
    %37 = vector.shape_cast %36 : vector<1x128x128xf32> to vector<128x128xf32>
    %cst_31 = arith.constant dense<0.000000e+00> : vector<2x128xf32>
    %38 = tpu.matmul %35, %37, %cst_31 {dimension_numbers = #tpu.dot_dimension_numbers<[1], [0], [0], [1], [0, 0, 1, 1], [], []>} : vector<2x128xf32>, vector<128x128xf32>, vector<2x128xf32> -> vector<2x128xf32>
    %c4 = arith.constant 4 : index
    %c0_32 = arith.constant 0 : index
    %c0_33 = arith.constant 0 : index
    %39 = vector.load %arg4[%c4, %c0_32, %c0_33] : memref<5x1x128xf32, #tpu.memory_space<vmem>>, vector<1x1x128xf32>
    %40 = vector.shape_cast %39 : vector<1x1x128xf32> to vector<1x128xf32>
    %41 = vector.broadcast %40 : vector<1x128xf32> to vector<2x128xf32>
    %42 = arith.addf %38, %41 : vector<2x128xf32>
    %43 = vector.extract_strided_slice %42 {offsets = [0, 0], sizes = [2, 4], strides = [1, 1]} : vector<2x128xf32> to vector<2x4xf32>
    %c0_34 = arith.constant 0 : index
    %c0_35 = arith.constant 0 : index
    %44 = vector.load %arg5[%c0_34, %c0_35] : memref<2x4xf32, #tpu.memory_space<vmem>>, vector<2x4xf32>
    tpu.vector_store %arg5[%c0_34, %c0_35], %43 {strides = array<i32>} : memref<2x4xf32, #tpu.memory_space<vmem>>, vector<2x4xf32>,
    return
  }
  func.func @transform_0(%arg0: i32) -> (i32, i32) {
    %c0_i32 = arith.constant 0 : i32
    %c0_i32_0 = arith.constant 0 : i32
    return %arg0, %c0_i32 : i32, i32
  }
  func.func @transform_1(%arg0: i32) -> (i32, i32) {
    %c0_i32 = arith.constant 0 : i32
    %c0_i32_0 = arith.constant 0 : i32
    %c0_i32_1 = arith.constant 0 : i32
    return %c0_i32, %c0_i32_0 : i32, i32
  }
  func.func @transform_2(%arg0: i32) -> (i32, i32, i32) {
    %c0_i32 = arith.constant 0 : i32
    %c0_i32_0 = arith.constant 0 : i32
    %c0_i32_1 = arith.constant 0 : i32
    %c0_i32_2 = arith.constant 0 : i32
    return %c0_i32, %c0_i32_0, %c0_i32_1 : i32, i32, i32
  }
  func.func @transform_3(%arg0: i32) -> (i32, i32, i32) {
    %c0_i32 = arith.constant 0 : i32
    %c0_i32_0 = arith.constant 0 : i32
    %c0_i32_1 = arith.constant 0 : i32
    %c0_i32_2 = arith.constant 0 : i32
    return %c0_i32, %c0_i32_0, %c0_i32_1 : i32, i32, i32
  }
  func.func @transform_4(%arg0: i32) -> (i32, i32) {
    %c0_i32 = arith.constant 0 : i32
    %c0_i32_0 = arith.constant 0 : i32
    return %arg0, %c0_i32 : i32, i32
  }
}

</mosaic_0001>

<bundles_post_ra>
// kernel: dqn_forward.1
= control target key start
LH: loop header
LB: loop body
LE: loop exit
PB: predicated region body
PF: predicated region fallthrough
CT: control target
= control target key end

     0   :  { %9 = vsyncpa [#allocation3], 0  ;;  %s494_s0 = inlined_call_operand.hbm [shape: f32[2,16], index: 0, kind: input, shape index: {}]   ;;  %s495_s1 = inlined_call_operand.hbm [shape: f32[16,128], index: 1, kind: input, shape index: {}]   ;;  %s496_s2 = inlined_call_operand.hbm [shape: f32[4,128,128], index: 2, kind: input, shape index: {}]   ;;  %s497_s3 = inlined_call_operand.hbm [shape: f32[5,1,128], index: 3, kind: input, shape index: {}]   ;;  %s498_s4 = inlined_call_operand.hbm [shape: f32[2,4], index: 4, kind: output, shape index: {}]  }
   0x1   :  { %10 = vsyncpa [#allocation6], 0 }
   0x2   :  { %11 = vsyncpa [#allocation9], 0  ;;  %s28_s17 = sshll.u32 %s495_s1, 4  ;;  %s29_s17 = int_to_ptr.hbm [resolvable:$true] %s28_s17 }
   0x3   :  { %12 = vsyncpa [#allocation4], 0  ;;  %s445_s18 = smov [#allocation5]   ;;  %s18_s22 = sshll.u32 %s494_s0, 4  ;;  %s19_s22 = int_to_ptr.hbm [resolvable:$true] %s18_s22 }
   0x4   :  { %s30_s19 = sshll.u32 %s445_s18, 4  ;;  %s446_s23 = smov 128   ;;  %s31_s19 = int_to_ptr.vmem [resolvable:$true] %s30_s19 }
   0x5   :  { %s447_s24 = smov 8   ;;  %s448_s25 = smov [#allocation2]  }
   0x6   :  { %36 = dma.hbm_to_vmem [thread:$0]  %s29_s17, 256, %s31_s19, [#allocation6], %s446_s23, %s446_s23, %s447_s24  }
   0x7   :  { %s20_s26 = sshll.u32 %s448_s25, 4  ;;  %s41_s29 = sshll.u32 %s496_s2, 4  ;;  %s21_s26 = int_to_ptr.vmem [resolvable:$true] %s20_s26  ;;  %s42_s29 = int_to_ptr.hbm [resolvable:$true] %s41_s29 }
   0x8   :  { %23 = dma.hbm_to_vmem [thread:$0]  %s19_s22, 32, %s21_s26, [#allocation3]  }
   0x9   :  { %s54_s5 = sshll.u32 %s497_s3, 4  ;;  %s449_s6 = smov [#allocation7]   ;;  %s55_s5 = int_to_ptr.hbm [resolvable:$true] %s54_s5 }
   0xa   :  { %s43_s7 = sshll.u32 %s449_s6, 4  ;;  %s450_s0 = smov [#allocation8]   ;;  %s44_s7 = int_to_ptr.vmem [resolvable:$true] %s43_s7 }
   0xb   :  { %49 = dma.hbm_to_vmem [thread:$0]  %s42_s29, 8192, %s44_s7, [#allocation6], %s446_s23, %s446_s23, %s447_s24  }
   0xc   :  { %s56_s8 = sshll.u32 %s450_s0, 4  ;;  %s451_s9 = smov 16   ;;  %s57_s8 = int_to_ptr.vmem [resolvable:$true] %s56_s8 }
   0xd   :  { %s452_s10 = smov 1  }
   0xe   :  { %62 = dma.hbm_to_vmem [thread:$0]  %s55_s5, 80, %s57_s8, [#allocation9], %s451_s9, %s451_s9, %s452_s10  }
   0xf   :  { %437 = dma.done.wait [#allocation3], 32  }
  0x10   :  { %438 = vsyncadd [#allocation3], 4294967264 }
  0x11   :  { %439 = dma.done.wait [#allocation6], 8448  }
  0x12   :  { %440 = vsyncadd [#allocation6], 4294958848 }
  0x13   :  { %441 = dma.done.wait [#allocation9], 80  }
  0x14   :  { %442 = vsyncadd [#allocation9], 4294967216  ;;  %v81_v0 = vld [vmem:[#allocation5 + $0x8] sm:$0xff]  ;;  %v80_v1 = vld [vmem:[#allocation5] sm:$0xff]  ;;  %vm86_vm0 = vcmask 130048   ;;  %s453_s2 = smov [#allocation10]  }
  0x15   :  { %104 = vmatpush.msra.mxu0 %v81_v0  ;;  %v79_v2 = vld [vmem:[#allocation2] sm:$0x3]  ;;  %v126_v3 = vld [vmem:[#allocation7 + $0x78] sm:$0xff]  ;;  %v125_v4 = vld [vmem:[#allocation7 + $0x70] sm:$0xff]  ;;  %s288_s3 = sshll.u32 %s453_s2, 4  ;;  %s290_s13 = sshll.u32 %s498_s4, 4  ;;  %s289_s3 = int_to_ptr.vmem [resolvable:$true] %s288_s3  ;;  %s291_s13 = int_to_ptr.hbm [resolvable:$true] %s290_s13 }
  0x16   :  { %132 = vmatpush.msra.mxu1 %v126_v3  ;;  %v124_v5 = vld [vmem:[#allocation7 + $0x68] sm:$0xff]  ;;  %v123_v6 = vld [vmem:[#allocation7 + $0x60] sm:$0xff]  ;;  %v122_v7 = vld [vmem:[#allocation7 + $0x58] sm:$0xff]  ;;  %vm281_vm1 = vcmask 25600  }
  0x17   :  { %105 = vmatpush.msra.mxu0 %v80_v1  ;;  %v121_v8 = vld [vmem:[#allocation7 + $0x50] sm:$0xff]  ;;  %v120_v9 = vld [vmem:[#allocation7 + $0x48] sm:$0xff]  ;;  %v119_v10 = vld [vmem:[#allocation7 + $0x40] sm:$0xff] }
  0x18   :  { %302 = vmatmul.msk.f32.vlgmr.msra.gmra.mxu0 %vm86_vm0, %v79_v2  ;;  %133 = vmatpush.msra.mxu1 %v125_v4  ;;  %v118_v11 = vld [vmem:[#allocation7 + $0x38] sm:$0xff]  ;;  %v117_v12 = vld [vmem:[#allocation7 + $0x30] sm:$0xff]  ;;  %v116_v13 = vld [vmem:[#allocation7 + $0x28] sm:$0xff] }
  0x19   :  { %v115_v14 = vld [vmem:[#allocation7 + $0x20] sm:$0xff]  ;;  %v114_v15 = vld [vmem:[#allocation7 + $0x18] sm:$0xff]  ;;  %v113_v16 = vld [vmem:[#allocation7 + $0x10] sm:$0xff] }
  0x1a   :  { %134 = vmatpush.msra.mxu1 %v124_v5  ;;  %v112_v17 = vld [vmem:[#allocation7 + $0x8] sm:$0xff]  ;;  %v111_v18 = vld [vmem:[#allocation7] sm:$0xff]  ;;  %v169_v19 = vld [vmem:[#allocation7 + $0xf8] sm:$0xff] }
  0x1b   :  { %v168_v20 = vld [vmem:[#allocation7 + $0xf0] sm:$0xff]  ;;  %175 = vmatpush.msra.mxu2 %v169_v19  ;;  %v167_v21 = vld [vmem:[#allocation7 + $0xe8] sm:$0xff]  ;;  %v166_v22 = vld [vmem:[#allocation7 + $0xe0] sm:$0xff] }
  0x1c   :  { %135 = vmatpush.msra.mxu1 %v123_v6  ;;  %v165_v23 = vld [vmem:[#allocation7 + $0xd8] sm:$0xff]  ;;  %v164_v24 = vld [vmem:[#allocation7 + $0xd0] sm:$0xff]  ;;  %v163_v25 = vld [vmem:[#allocation7 + $0xc8] sm:$0xff] }
  0x1d   :  { %176 = vmatpush.msra.mxu2 %v168_v20  ;;  %v162_v26 = vld [vmem:[#allocation7 + $0xc0] sm:$0xff]  ;;  %v161_v27 = vld [vmem:[#allocation7 + $0xb8] sm:$0xff]  ;;  %v160_v28 = vld [vmem:[#allocation7 + $0xb0] sm:$0xff] }
  0x1e   :  { %136 = vmatpush.msra.mxu1 %v122_v7  ;;  %v159_v29 = vld [vmem:[#allocation7 + $0xa8] sm:$0xff]  ;;  %v158_v30 = vld [vmem:[#allocation7 + $0xa0] sm:$0xff]  ;;  %v157_v31 = vld [vmem:[#allocation7 + $0x98] sm:$0xff] }
  0x1f   :  { %177 = vmatpush.msra.mxu2 %v167_v21  ;;  %v312_v32 = vld [vmem:[#allocation8] ss:$0 sm:$0xff]  ;;  %v156_v36 = vld [vmem:[#allocation7 + $0x90] sm:$0xff]  ;;  %v155_v37 = vld [vmem:[#allocation7 + $0x88] sm:$0xff] }
  0x20   :  { %137 = vmatpush.msra.mxu1 %v121_v8  ;;  %v154_v38 = vld [vmem:[#allocation7 + $0x80] sm:$0xff]  ;;  %v212_v39 = vld [vmem:[#allocation7 + $0x178] sm:$0xff]  ;;  %v211_v40 = vld [vmem:[#allocation7 + $0x170] sm:$0xff] }
  0x21   :  { %178 = vmatpush.msra.mxu2 %v166_v22  ;;  %218 = vmatpush.msra.mxu3 %v212_v39  ;;  %v210_v41 = vld [vmem:[#allocation7 + $0x168] sm:$0xff]  ;;  %v209_v42 = vld [vmem:[#allocation7 + $0x160] sm:$0xff]  ;;  %v208_v43 = vld [vmem:[#allocation7 + $0x158] sm:$0xff] }
  0x22   :  { %138 = vmatpush.msra.mxu1 %v120_v9  ;;  %v207_v44 = vld [vmem:[#allocation7 + $0x150] sm:$0xff]  ;;  %v206_v45 = vld [vmem:[#allocation7 + $0x148] sm:$0xff]  ;;  %v205_v46 = vld [vmem:[#allocation7 + $0x140] sm:$0xff] }
  0x23   :  { %179 = vmatpush.msra.mxu2 %v165_v23  ;;  %219 = vmatpush.msra.mxu3 %v211_v40  ;;  %v204_v47 = vld [vmem:[#allocation7 + $0x138] sm:$0xff]  ;;  %v203_v48 = vld [vmem:[#allocation7 + $0x130] sm:$0xff]  ;;  %v202_v49 = vld [vmem:[#allocation7 + $0x128] sm:$0xff] }
  0x24   :  { %139 = vmatpush.msra.mxu1 %v119_v10  ;;  %v201_v50 = vld [vmem:[#allocation7 + $0x120] sm:$0xff]  ;;  %v200_v51 = vld [vmem:[#allocation7 + $0x118] sm:$0xff]  ;;  %v199_v56 = vld [vmem:[#allocation7 + $0x110] sm:$0xff] }
  0x25   :  { %180 = vmatpush.msra.mxu2 %v164_v24  ;;  %220 = vmatpush.msra.mxu3 %v210_v41  ;;  %v313_v52 = vld [vmem:[#allocation8 + $0x1] ss:$0 sm:$0xff]  ;;  %v198_v57 = vld [vmem:[#allocation7 + $0x108] sm:$0xff]  ;;  %v255_v59 = vld [vmem:[#allocation7 + $0x1f8] sm:$0xff] }
  0x26   :  { %140 = vmatpush.msra.mxu1 %v118_v11  ;;  %v197_v58 = vld [vmem:[#allocation7 + $0x100] sm:$0xff]  ;;  %v254_v60 = vld [vmem:[#allocation7 + $0x1f0] sm:$0xff]  ;;  %261 = vmatpush.msrb.mxu0 %v255_v59  ;;  %v253_v61 = vld [vmem:[#allocation7 + $0x1e8] sm:$0xff] }
  0x27   :  { %181 = vmatpush.msra.mxu2 %v163_v25  ;;  %221 = vmatpush.msra.mxu3 %v209_v42  ;;  %v252_v62 = vld [vmem:[#allocation7 + $0x1e0] sm:$0xff]  ;;  %v251_v63 = vld [vmem:[#allocation7 + $0x1d8] sm:$0xff]  ;;  %v250_v0 = vld [vmem:[#allocation7 + $0x1d0] sm:$0xff] }
  0x28   :  { %141 = vmatpush.msra.mxu1 %v117_v12  ;;  %262 = vmatpush.msrb.mxu0 %v254_v60  ;;  %v249_v1 = vld [vmem:[#allocation7 + $0x1c8] sm:$0xff]  ;;  %v248_v2 = vld [vmem:[#allocation7 + $0x1c0] sm:$0xff]  ;;  %v247_v3 = vld [vmem:[#allocation7 + $0x1b8] sm:$0xff] }
  0x29   :  { %182 = vmatpush.msra.mxu2 %v162_v26  ;;  %222 = vmatpush.msra.mxu3 %v208_v43  ;;  %v246_v4 = vld [vmem:[#allocation7 + $0x1b0] sm:$0xff]  ;;  %v245_v5 = vld [vmem:[#allocation7 + $0x1a8] sm:$0xff]  ;;  %v244_v6 = vld [vmem:[#allocation7 + $0x1a0] sm:$0xff] }
  0x2a   :  { %142 = vmatpush.msra.mxu1 %v116_v13  ;;  %263 = vmatpush.msrb.mxu0 %v253_v61  ;;  %v243_v7 = vld [vmem:[#allocation7 + $0x198] sm:$0xff]  ;;  %v314_v8 = vld [vmem:[#allocation8 + $0x2] ss:$0 sm:$0xff]  ;;  %v242_v12 = vld [vmem:[#allocation7 + $0x190] sm:$0xff] }
  0x2b   :  { %183 = vmatpush.msra.mxu2 %v161_v27  ;;  %223 = vmatpush.msra.mxu3 %v207_v44  ;;  %v241_v13 = vld [vmem:[#allocation7 + $0x188] sm:$0xff]  ;;  %v316_v19 = vld [vmem:[#allocation8 + $0x4] ss:$0 sm:$0xff] }
  0x2c   :  { %143 = vmatpush.msra.mxu1 %v115_v14  ;;  %264 = vmatpush.msrb.mxu0 %v252_v62  ;;  %v240_v14 = vld [vmem:[#allocation7 + $0x180] sm:$0xff] }
  0x2d   :  { %184 = vmatpush.msra.mxu2 %v160_v28  ;;  %224 = vmatpush.msra.mxu3 %v206_v45 }
  0x2e   :  { %144 = vmatpush.msra.mxu1 %v114_v15  ;;  %265 = vmatpush.msrb.mxu0 %v251_v63  ;;  %v315_v15 = vld [vmem:[#allocation8 + $0x3] ss:$0 sm:$0xff] }
  0x2f   :  { %185 = vmatpush.msra.mxu2 %v159_v29  ;;  %225 = vmatpush.msra.mxu3 %v205_v46 }
  0x30   :  { %145 = vmatpush.msra.mxu1 %v113_v16  ;;  %266 = vmatpush.msrb.mxu0 %v250_v0 }
  0x31   :  { %186 = vmatpush.msra.mxu2 %v158_v30  ;;  %226 = vmatpush.msra.mxu3 %v204_v47 }
  0x32   :  { %146 = vmatpush.msra.mxu1 %v112_v17  ;;  %267 = vmatpush.msrb.mxu0 %v249_v1 }
  0x33   :  { %187 = vmatpush.msra.mxu2 %v157_v31  ;;  %227 = vmatpush.msra.mxu3 %v203_v48 }
  0x34   :  { %147 = vmatpush.msra.mxu1 %v111_v18  ;;  %268 = vmatpush.msrb.mxu0 %v248_v2 }
  0x35   :  { %188 = vmatpush.msra.mxu2 %v156_v36  ;;  %228 = vmatpush.msra.mxu3 %v202_v49 }
  0x36   :  { %269 = vmatpush.msrb.mxu0 %v247_v3 }
  0x37   :  { %189 = vmatpush.msra.mxu2 %v155_v37  ;;  %229 = vmatpush.msra.mxu3 %v201_v50 }
  0x38   :  { %270 = vmatpush.msrb.mxu0 %v246_v4 }
  0x39   :  { %190 = vmatpush.msra.mxu2 %v154_v38  ;;  %230 = vmatpush.msra.mxu3 %v200_v51 }
  0x3a   :  { %271 = vmatpush.msrb.mxu0 %v245_v5 }
  0x3b   :  { %231 = vmatpush.msra.mxu3 %v199_v56 }
  0x3c   :  { %272 = vmatpush.msrb.mxu0 %v244_v6 }
  0x3d   :  { %232 = vmatpush.msra.mxu3 %v198_v57 }
  0x3e   :  { %273 = vmatpush.msrb.mxu0 %v243_v7 }
  0x3f   :  { %233 = vmatpush.msra.mxu3 %v197_v58 }
  0x40   :  { %274 = vmatpush.msrb.mxu0 %v242_v12 }
  0x42   :  { %275 = vmatpush.msrb.mxu0 %v241_v13 }
  0x44   :  { %276 = vmatpush.msrb.mxu0 %v240_v14 }
  0x95   :  { %v107_v33 = vpop.f32.mrf.mxu0 }
  0x96   :  { %v108_v34 = vadd.f32 %v312_v32, %v107_v33 }
  0x98   :  { %v110_v35 = vmax.f32 %v108_v34, 0.0 }
  0x9a   :  { %148 = vmatmul.f32.vlgmr.msra.gmra.mxu1 %v110_v35 }
 0x117   :  { %v149_v53 = vpop.f32.mrf.mxu1 }
 0x118   :  { %v150_v54 = vadd.f32 %v313_v52, %v149_v53 }
 0x11a   :  { %v152_v55 = vmax.f32 %v150_v54, 0.0 }
 0x11c   :  { %191 = vmatmul.f32.vlgmr.msra.gmra.mxu2 %v152_v55 }
 0x19f   :  { %v192_v9 = vpop.f32.mrf.mxu2 }
 0x1a0   :  { %v193_v10 = vadd.f32 %v314_v8, %v192_v9 }
 0x1a2   :  { %v195_v11 = vmax.f32 %v193_v10, 0.0 }
 0x1a4   :  { %234 = vmatmul.f32.vlgmr.msra.gmra.mxu3 %v195_v11 }
 0x227   :  { %v235_v16 = vpop.f32.mrf.mxu3 }
 0x228   :  { %v236_v17 = vadd.f32 %v315_v15, %v235_v16 }
 0x22a   :  { %v238_v18 = vmax.f32 %v236_v17, 0.0 }
 0x22c   :  { %277 = vmatmul.f32.vlgmr.msrb.gmra.mxu0 %v238_v18 }
 0x2a9   :  { %v278_v20 = vpop.f32.mrf.mxu0 }
 0x2aa   :  { %v279_v21 = vadd.f32 %v316_v19, %v278_v20 }
 0x2ac   :  { %282 = vst.msk [vmem:[#allocation10] sm:$0x3] %vm281_vm1, %v279_v21 }
 0x2ad   :  { %293 = dma.vmem_to_hbm [thread:$0]  %s289_s3, 32, %s291_s13, [#allocation4]  }
 0x2ae   :  { %443 = dma.done.wait [#allocation4], 32  }
 0x2af   :  { %444 = vsyncadd [#allocation4], 4294967264 }
 0x2b0   :  { %298 = vsyncpa [#allocation3], 1 }
 0x2b1   :  { %299 = vsyncpa [#allocation6], 1 }
 0x2b2   :  { %300 = vsyncpa [#allocation9], 1 }
 0x2b3   :  { %301 = vsyncpa [#allocation4], 1 }

</bundles_post_ra>
